<compile_context>
chip_gen: v6e
topology: v6e:2x2x1
jax: 0.10.0
libtpu: 0.0.40
codegen_flags: <defaults>
</compile_context>

<pallas_src>
import jax
import jax.numpy as jnp
from jax import lax
from jax.experimental import pallas as pl
from jax.experimental.pallas import tpu as pltpu

_CHUNK_ROWS = 256   # sublane rows per inner fori_loop step (bounds live ranges)
_MAX_TILE_ROWS = 2048  # 256K batch elems / step -> 8 MiB double-buffered VMEM


def _round_up(n, m):
    return ((n + m - 1) // m) * m


def _bc_mlp_kernel(p_ref, x_ref, o_ref):
    # p_ref: SMEM f32[46] = [w1 row-major (3x9) | b1 (9) | w2 (9) | b2 (1)]
    # x_ref: VMEM (3, TILE_ROWS, 128)   o_ref: VMEM (TILE_ROWS, 128)
    tile_rows = o_ref.shape[0]
    chunk = min(_CHUNK_ROWS, tile_rows)
    n_chunks = tile_rows // chunk          # exact by construction in the wrapper

    # Hoist all scalar SMEM reads out of the row loop.
    w1 = [[p_ref[j * 9 + k] for k in range(9)] for j in range(3)]
    b1 = [p_ref[27 + k] for k in range(9)]
    w2 = [p_ref[36 + k] for k in range(9)]
    b2 = p_ref[45]

    def body(c, carry):
        r0 = pl.multiple_of(c * chunk, chunk)
        x0 = x_ref[0, pl.ds(r0, chunk), :]     # (chunk, 128)
        x1 = x_ref[1, pl.ds(r0, chunk), :]
        x2 = x_ref[2, pl.ds(r0, chunk), :]

        # o = b2 + sum_k relu(b1_k + sum_j x_j * w1[j,k]) * w2_k   (pure VPU FMA)
        acc = jnp.full((chunk, 128), b2, jnp.float32)
        for k in range(9):                     # unrolled at trace time
            h = x0 * w1[0][k] + x1 * w1[1][k] + x2 * w1[2][k] + b1[k]
            acc = acc + jnp.maximum(h, 0.0) * w2[k]

        o_ref[pl.ds(r0, chunk), :] = acc
        return carry

    lax.fori_loop(0, n_chunks, body, 0, unroll=False)


def behavior_cloning_forward(x, w1, b1, w2, b2):
    """x: (B, 3) f32, w1: (3, 9), b1: (9,), w2: (9, 1), b2: (1,) -> (B, 1) f32."""
    B = x.shape[0]

    # --- tile sizing: dense (rows, 128) slabs of the batch --------------------
    rows = pl.cdiv(B, 128)                     # 128-wide lane rows needed
    if rows <= _CHUNK_ROWS:
        tile_rows = max(8, _round_up(rows, 8))                 # one small tile
    else:
        # Big batch: multiples of the 256-row inner chunk, capped at 2048 rows,
        # and split so n_tiles >= 2 (feeds both TensorCores on v7x).
        tile_rows = min(_MAX_TILE_ROWS,
                        _round_up(pl.cdiv(rows, 2), _CHUNK_ROWS))
    n_tiles = pl.cdiv(rows, tile_rows)
    rows_pad = n_tiles * tile_rows
    b_pad = rows_pad * 128

    # --- relayout: (B,3) -> (3, rows_pad, 128), batch on sublane x lane -------
    x_p = jnp.pad(x.astype(jnp.float32), ((0, b_pad - B), (0, 0)))  # (b_pad, 3)
    x_t = x_p.reshape(rows_pad, 128, 3).transpose(2, 0, 1)          # (3, R, 128)

    # --- flat f32[46] parameter vector (scalar-prefetched into SMEM) ----------
    params = jnp.concatenate([
        w1.astype(jnp.float32).reshape(-1),    # 0..26  : w1[j,k] at j*9+k
        b1.astype(jnp.float32).reshape(-1),    # 27..35 : b1
        w2.astype(jnp.float32).reshape(-1),    # 36..44 : w2
        b2.astype(jnp.float32).reshape(-1),    # 45     : b2
    ])

    cost = pl.CostEstimate(
        flops=2 * B * (3 * 9 + 9 * 1),
        transcendentals=0,
        bytes_accessed=B * (3 + 1) * 4 + params.size * 4,
    )

    grid_spec = pltpu.PrefetchScalarGridSpec(
        num_scalar_prefetch=1,                 # params -> SMEM, resident all steps
        grid=(n_tiles,),
        in_specs=[
            pl.BlockSpec((3, tile_rows, 128), lambda i, p: (0, i, 0)),
        ],
        out_specs=pl.BlockSpec((tile_rows, 128), lambda i, p: (i, 0)),
    )

    out = pl.pallas_call(
        _bc_mlp_kernel,
        out_shape=jax.ShapeDtypeStruct((rows_pad, 128), jnp.float32),
        grid_spec=grid_spec,
        compiler_params=pltpu.CompilerParams(
            dimension_semantics=("parallel",),
            vmem_limit_bytes=32 * 1024 * 1024,   # 8 MiB used; explicit headroom
        ),
        cost_estimate=cost,
    )(params, x_t)

    # (rows_pad, 128) row-major flattens to batch order; no output transpose.
    return out.reshape(b_pad, 1)[:B]


def init_params(key):
    """Deterministic init mirroring nn.Linear shapes: fc(3->9), output(9->1)."""
    k1, k2, k3, k4 = jax.random.split(key, 4)
    # PyTorch nn.Linear default init is U(-1/sqrt(fan_in), 1/sqrt(fan_in)).
    bound1 = 1.0 / jnp.sqrt(3.0)
    bound2 = 1.0 / jnp.sqrt(9.0)
    w1 = jax.random.uniform(k1, (3, 9), jnp.float32, -bound1, bound1)   # fc.weight.T
    b1 = jax.random.uniform(k2, (9,), jnp.float32, -bound1, bound1)     # fc.bias
    w2 = jax.random.uniform(k3, (9, 1), jnp.float32, -bound2, bound2)   # output.weight.T
    b2 = jax.random.uniform(k4, (1,), jnp.float32, -bound2, bound2)     # output.bias
    return w1, b1, w2, b2


if __name__ == "__main__":
    key = jax.random.PRNGKey(0)
    kx, kp = jax.random.split(key)

    batch = 8
    x = jax.random.normal(kx, (batch, 3), jnp.float32)
    w1, b1, w2, b2 = init_params(kp)

    out = behavior_cloning_forward(x, w1, b1, w2, b2)
    out = jax.block_until_ready(out)

    # Reference check in plain JAX (same math as the PyTorch forward).
    ref = jnp.maximum(x @ w1 + b1, 0.0) @ w2 + b2
    assert out.shape == (batch, 1)
    assert jnp.allclose(out, ref, atol=1e-5, rtol=1e-5)

    # Exercise a multi-tile path too (still small enough to run anywhere).
    big = 70_000                                  # > 256 rows -> >= 2 grid tiles
    xb = jax.random.normal(kx, (big, 3), jnp.float32)
    outb = jax.block_until_ready(behavior_cloning_forward(xb, w1, b1, w2, b2))
    refb = jnp.maximum(xb @ w1 + b1, 0.0) @ w2 + b2
    assert outb.shape == (big, 1)
    assert jnp.allclose(outb, refb, atol=1e-5, rtol=1e-5)

    print("KERNEL_OK")
</pallas_src>

<mosaic_0001>
module attributes {stable_mosaic.version = 11 : i64} {
  func.func @_bc_mlp_kernel(%arg0: i32, %arg1: memref<46xf32, #tpu.memory_space<smem>>, %arg2: memref<3x8x128xf32, #tpu.memory_space<vmem>>, %arg3: memref<8x128xf32, #tpu.memory_space<vmem>>) attributes {dimension_semantics = [#tpu.dimension_semantics<parallel>], iteration_bounds = array<i64: 1>, scalar_prefetch = 1 : i64, scratch_operands = 0 : i64, tpu.core_type = #tpu.core_type<tc>, window_params = [{transform_indices = @transform_0, window_bounds = array<i64: 3, 8, 128>}, {transform_indices = @transform_1, window_bounds = array<i64: 8, 128>}]} {
    %c0 = arith.constant 0 : index
    %0 = memref.load %arg1[%c0] : memref<46xf32, #tpu.memory_space<smem>>
    %c1 = arith.constant 1 : index
    %1 = memref.load %arg1[%c1] : memref<46xf32, #tpu.memory_space<smem>>
    %c2 = arith.constant 2 : index
    %2 = memref.load %arg1[%c2] : memref<46xf32, #tpu.memory_space<smem>>
    %c3 = arith.constant 3 : index
    %3 = memref.load %arg1[%c3] : memref<46xf32, #tpu.memory_space<smem>>
    %c4 = arith.constant 4 : index
    %4 = memref.load %arg1[%c4] : memref<46xf32, #tpu.memory_space<smem>>
    %c5 = arith.constant 5 : index
    %5 = memref.load %arg1[%c5] : memref<46xf32, #tpu.memory_space<smem>>
    %c6 = arith.constant 6 : index
    %6 = memref.load %arg1[%c6] : memref<46xf32, #tpu.memory_space<smem>>
    %c7 = arith.constant 7 : index
    %7 = memref.load %arg1[%c7] : memref<46xf32, #tpu.memory_space<smem>>
    %c8 = arith.constant 8 : index
    %8 = memref.load %arg1[%c8] : memref<46xf32, #tpu.memory_space<smem>>
    %c9 = arith.constant 9 : index
    %9 = memref.load %arg1[%c9] : memref<46xf32, #tpu.memory_space<smem>>
    %c10 = arith.constant 10 : index
    %10 = memref.load %arg1[%c10] : memref<46xf32, #tpu.memory_space<smem>>
    %c11 = arith.constant 11 : index
    %11 = memref.load %arg1[%c11] : memref<46xf32, #tpu.memory_space<smem>>
    %c12 = arith.constant 12 : index
    %12 = memref.load %arg1[%c12] : memref<46xf32, #tpu.memory_space<smem>>
    %c13 = arith.constant 13 : index
    %13 = memref.load %arg1[%c13] : memref<46xf32, #tpu.memory_space<smem>>
    %c14 = arith.constant 14 : index
    %14 = memref.load %arg1[%c14] : memref<46xf32, #tpu.memory_space<smem>>
    %c15 = arith.constant 15 : index
    %15 = memref.load %arg1[%c15] : memref<46xf32, #tpu.memory_space<smem>>
    %c16 = arith.constant 16 : index
    %16 = memref.load %arg1[%c16] : memref<46xf32, #tpu.memory_space<smem>>
    %c17 = arith.constant 17 : index
    %17 = memref.load %arg1[%c17] : memref<46xf32, #tpu.memory_space<smem>>
    %c18 = arith.constant 18 : index
    %18 = memref.load %arg1[%c18] : memref<46xf32, #tpu.memory_space<smem>>
    %c19 = arith.constant 19 : index
    %19 = memref.load %arg1[%c19] : memref<46xf32, #tpu.memory_space<smem>>
    %c20 = arith.constant 20 : index
    %20 = memref.load %arg1[%c20] : memref<46xf32, #tpu.memory_space<smem>>
    %c21 = arith.constant 21 : index
    %21 = memref.load %arg1[%c21] : memref<46xf32, #tpu.memory_space<smem>>
    %c22 = arith.constant 22 : index
    %22 = memref.load %arg1[%c22] : memref<46xf32, #tpu.memory_space<smem>>
    %c23 = arith.constant 23 : index
    %23 = memref.load %arg1[%c23] : memref<46xf32, #tpu.memory_space<smem>>
    %c24 = arith.constant 24 : index
    %24 = memref.load %arg1[%c24] : memref<46xf32, #tpu.memory_space<smem>>
    %c25 = arith.constant 25 : index
    %25 = memref.load %arg1[%c25] : memref<46xf32, #tpu.memory_space<smem>>
    %c26 = arith.constant 26 : index
    %26 = memref.load %arg1[%c26] : memref<46xf32, #tpu.memory_space<smem>>
    %c27 = arith.constant 27 : index
    %27 = memref.load %arg1[%c27] : memref<46xf32, #tpu.memory_space<smem>>
    %c28 = arith.constant 28 : index
    %28 = memref.load %arg1[%c28] : memref<46xf32, #tpu.memory_space<smem>>
    %c29 = arith.constant 29 : index
    %29 = memref.load %arg1[%c29] : memref<46xf32, #tpu.memory_space<smem>>
    %c30 = arith.constant 30 : index
    %30 = memref.load %arg1[%c30] : memref<46xf32, #tpu.memory_space<smem>>
    %c31 = arith.constant 31 : index
    %31 = memref.load %arg1[%c31] : memref<46xf32, #tpu.memory_space<smem>>
    %c32 = arith.constant 32 : index
    %32 = memref.load %arg1[%c32] : memref<46xf32, #tpu.memory_space<smem>>
    %c33 = arith.constant 33 : index
    %33 = memref.load %arg1[%c33] : memref<46xf32, #tpu.memory_space<smem>>
    %c34 = arith.constant 34 : index
    %34 = memref.load %arg1[%c34] : memref<46xf32, #tpu.memory_space<smem>>
    %c35 = arith.constant 35 : index
    %35 = memref.load %arg1[%c35] : memref<46xf32, #tpu.memory_space<smem>>
    %c36 = arith.constant 36 : index
    %36 = memref.load %arg1[%c36] : memref<46xf32, #tpu.memory_space<smem>>
    %c37 = arith.constant 37 : index
    %37 = memref.load %arg1[%c37] : memref<46xf32, #tpu.memory_space<smem>>
    %c38 = arith.constant 38 : index
    %38 = memref.load %arg1[%c38] : memref<46xf32, #tpu.memory_space<smem>>
    %c39 = arith.constant 39 : index
    %39 = memref.load %arg1[%c39] : memref<46xf32, #tpu.memory_space<smem>>
    %c40 = arith.constant 40 : index
    %40 = memref.load %arg1[%c40] : memref<46xf32, #tpu.memory_space<smem>>
    %c41 = arith.constant 41 : index
    %41 = memref.load %arg1[%c41] : memref<46xf32, #tpu.memory_space<smem>>
    %c42 = arith.constant 42 : index
    %42 = memref.load %arg1[%c42] : memref<46xf32, #tpu.memory_space<smem>>
    %c43 = arith.constant 43 : index
    %43 = memref.load %arg1[%c43] : memref<46xf32, #tpu.memory_space<smem>>
    %c44 = arith.constant 44 : index
    %44 = memref.load %arg1[%c44] : memref<46xf32, #tpu.memory_space<smem>>
    %c45 = arith.constant 45 : index
    %45 = memref.load %arg1[%c45] : memref<46xf32, #tpu.memory_space<smem>>
    %c0_i32 = arith.constant 0 : i32
    %c8_i32 = arith.constant 8 : i32
    %46 = arith.muli %c0_i32, %c8_i32 : i32
    %47 = tpu.assume_multiple %46, 8 : i32
    %c0_0 = arith.constant 0 : index
    %48 = arith.index_cast %47 : i32 to index
    %c0_1 = arith.constant 0 : index
    %49 = vector.load %arg2[%c0_0, %48, %c0_1] : memref<3x8x128xf32, #tpu.memory_space<vmem>>, vector<1x8x128xf32>
    %50 = vector.shape_cast %49 : vector<1x8x128xf32> to vector<8x128xf32>
    %c1_2 = arith.constant 1 : index
    %51 = arith.index_cast %47 : i32 to index
    %c0_3 = arith.constant 0 : index
    %52 = vector.load %arg2[%c1_2, %51, %c0_3] : memref<3x8x128xf32, #tpu.memory_space<vmem>>, vector<1x8x128xf32>
    %53 = vector.shape_cast %52 : vector<1x8x128xf32> to vector<8x128xf32>
    %c2_4 = arith.constant 2 : index
    %54 = arith.index_cast %47 : i32 to index
    %c0_5 = arith.constant 0 : index
    %55 = vector.load %arg2[%c2_4, %54, %c0_5] : memref<3x8x128xf32, #tpu.memory_space<vmem>>, vector<1x8x128xf32>
    %56 = vector.shape_cast %55 : vector<1x8x128xf32> to vector<8x128xf32>
    %57 = vector.broadcast %45 : f32 to vector<8x128xf32>
    %58 = vector.broadcast %0 : f32 to vector<8x128xf32>
    %59 = arith.mulf %50, %58 : vector<8x128xf32>
    %60 = vector.broadcast %9 : f32 to vector<8x128xf32>
    %61 = arith.mulf %53, %60 : vector<8x128xf32>
    %62 = arith.addf %59, %61 : vector<8x128xf32>
    %63 = vector.broadcast %18 : f32 to vector<8x128xf32>
    %64 = arith.mulf %56, %63 : vector<8x128xf32>
    %65 = arith.addf %62, %64 : vector<8x128xf32>
    %66 = vector.broadcast %27 : f32 to vector<8x128xf32>
    %67 = arith.addf %65, %66 : vector<8x128xf32>
    %cst = arith.constant 0.000000e+00 : f32
    %68 = vector.broadcast %cst : f32 to vector<8x128xf32>
    %69 = arith.maximumf %67, %68 : vector<8x128xf32>
    %70 = vector.broadcast %36 : f32 to vector<8x128xf32>
    %71 = arith.mulf %69, %70 : vector<8x128xf32>
    %72 = arith.addf %57, %71 : vector<8x128xf32>
    %73 = vector.broadcast %1 : f32 to vector<8x128xf32>
    %74 = arith.mulf %50, %73 : vector<8x128xf32>
    %75 = vector.broadcast %10 : f32 to vector<8x128xf32>
    %76 = arith.mulf %53, %75 : vector<8x128xf32>
    %77 = arith.addf %74, %76 : vector<8x128xf32>
    %78 = vector.broadcast %19 : f32 to vector<8x128xf32>
    %79 = arith.mulf %56, %78 : vector<8x128xf32>
    %80 = arith.addf %77, %79 : vector<8x128xf32>
    %81 = vector.broadcast %28 : f32 to vector<8x128xf32>
    %82 = arith.addf %80, %81 : vector<8x128xf32>
    %cst_6 = arith.constant 0.000000e+00 : f32
    %83 = vector.broadcast %cst_6 : f32 to vector<8x128xf32>
    %84 = arith.maximumf %82, %83 : vector<8x128xf32>
    %85 = vector.broadcast %37 : f32 to vector<8x128xf32>
    %86 = arith.mulf %84, %85 : vector<8x128xf32>
    %87 = arith.addf %72, %86 : vector<8x128xf32>
    %88 = vector.broadcast %2 : f32 to vector<8x128xf32>
    %89 = arith.mulf %50, %88 : vector<8x128xf32>
    %90 = vector.broadcast %11 : f32 to vector<8x128xf32>
    %91 = arith.mulf %53, %90 : vector<8x128xf32>
    %92 = arith.addf %89, %91 : vector<8x128xf32>
    %93 = vector.broadcast %20 : f32 to vector<8x128xf32>
    %94 = arith.mulf %56, %93 : vector<8x128xf32>
    %95 = arith.addf %92, %94 : vector<8x128xf32>
    %96 = vector.broadcast %29 : f32 to vector<8x128xf32>
    %97 = arith.addf %95, %96 : vector<8x128xf32>
    %cst_7 = arith.constant 0.000000e+00 : f32
    %98 = vector.broadcast %cst_7 : f32 to vector<8x128xf32>
    %99 = arith.maximumf %97, %98 : vector<8x128xf32>
    %100 = vector.broadcast %38 : f32 to vector<8x128xf32>
    %101 = arith.mulf %99, %100 : vector<8x128xf32>
    %102 = arith.addf %87, %101 : vector<8x128xf32>
    %103 = vector.broadcast %3 : f32 to vector<8x128xf32>
    %104 = arith.mulf %50, %103 : vector<8x128xf32>
    %105 = vector.broadcast %12 : f32 to vector<8x128xf32>
    %106 = arith.mulf %53, %105 : vector<8x128xf32>
    %107 = arith.addf %104, %106 : vector<8x128xf32>
    %108 = vector.broadcast %21 : f32 to vector<8x128xf32>
    %109 = arith.mulf %56, %108 : vector<8x128xf32>
    %110 = arith.addf %107, %109 : vector<8x128xf32>
    %111 = vector.broadcast %30 : f32 to vector<8x128xf32>
    %112 = arith.addf %110, %111 : vector<8x128xf32>
    %cst_8 = arith.constant 0.000000e+00 : f32
    %113 = vector.broadcast %cst_8 : f32 to vector<8x128xf32>
    %114 = arith.maximumf %112, %113 : vector<8x128xf32>
    %115 = vector.broadcast %39 : f32 to vector<8x128xf32>
    %116 = arith.mulf %114, %115 : vector<8x128xf32>
    %117 = arith.addf %102, %116 : vector<8x128xf32>
    %118 = vector.broadcast %4 : f32 to vector<8x128xf32>
    %119 = arith.mulf %50, %118 : vector<8x128xf32>
    %120 = vector.broadcast %13 : f32 to vector<8x128xf32>
    %121 = arith.mulf %53, %120 : vector<8x128xf32>
    %122 = arith.addf %119, %121 : vector<8x128xf32>
    %123 = vector.broadcast %22 : f32 to vector<8x128xf32>
    %124 = arith.mulf %56, %123 : vector<8x128xf32>
    %125 = arith.addf %122, %124 : vector<8x128xf32>
    %126 = vector.broadcast %31 : f32 to vector<8x128xf32>
    %127 = arith.addf %125, %126 : vector<8x128xf32>
    %cst_9 = arith.constant 0.000000e+00 : f32
    %128 = vector.broadcast %cst_9 : f32 to vector<8x128xf32>
    %129 = arith.maximumf %127, %128 : vector<8x128xf32>
    %130 = vector.broadcast %40 : f32 to vector<8x128xf32>
    %131 = arith.mulf %129, %130 : vector<8x128xf32>
    %132 = arith.addf %117, %131 : vector<8x128xf32>
    %133 = vector.broadcast %5 : f32 to vector<8x128xf32>
    %134 = arith.mulf %50, %133 : vector<8x128xf32>
    %135 = vector.broadcast %14 : f32 to vector<8x128xf32>
    %136 = arith.mulf %53, %135 : vector<8x128xf32>
    %137 = arith.addf %134, %136 : vector<8x128xf32>
    %138 = vector.broadcast %23 : f32 to vector<8x128xf32>
    %139 = arith.mulf %56, %138 : vector<8x128xf32>
    %140 = arith.addf %137, %139 : vector<8x128xf32>
    %141 = vector.broadcast %32 : f32 to vector<8x128xf32>
    %142 = arith.addf %140, %141 : vector<8x128xf32>
    %cst_10 = arith.constant 0.000000e+00 : f32
    %143 = vector.broadcast %cst_10 : f32 to vector<8x128xf32>
    %144 = arith.maximumf %142, %143 : vector<8x128xf32>
    %145 = vector.broadcast %41 : f32 to vector<8x128xf32>
    %146 = arith.mulf %144, %145 : vector<8x128xf32>
    %147 = arith.addf %132, %146 : vector<8x128xf32>
    %148 = vector.broadcast %6 : f32 to vector<8x128xf32>
    %149 = arith.mulf %50, %148 : vector<8x128xf32>
    %150 = vector.broadcast %15 : f32 to vector<8x128xf32>
    %151 = arith.mulf %53, %150 : vector<8x128xf32>
    %152 = arith.addf %149, %151 : vector<8x128xf32>
    %153 = vector.broadcast %24 : f32 to vector<8x128xf32>
    %154 = arith.mulf %56, %153 : vector<8x128xf32>
    %155 = arith.addf %152, %154 : vector<8x128xf32>
    %156 = vector.broadcast %33 : f32 to vector<8x128xf32>
    %157 = arith.addf %155, %156 : vector<8x128xf32>
    %cst_11 = arith.constant 0.000000e+00 : f32
    %158 = vector.broadcast %cst_11 : f32 to vector<8x128xf32>
    %159 = arith.maximumf %157, %158 : vector<8x128xf32>
    %160 = vector.broadcast %42 : f32 to vector<8x128xf32>
    %161 = arith.mulf %159, %160 : vector<8x128xf32>
    %162 = arith.addf %147, %161 : vector<8x128xf32>
    %163 = vector.broadcast %7 : f32 to vector<8x128xf32>
    %164 = arith.mulf %50, %163 : vector<8x128xf32>
    %165 = vector.broadcast %16 : f32 to vector<8x128xf32>
    %166 = arith.mulf %53, %165 : vector<8x128xf32>
    %167 = arith.addf %164, %166 : vector<8x128xf32>
    %168 = vector.broadcast %25 : f32 to vector<8x128xf32>
    %169 = arith.mulf %56, %168 : vector<8x128xf32>
    %170 = arith.addf %167, %169 : vector<8x128xf32>
    %171 = vector.broadcast %34 : f32 to vector<8x128xf32>
    %172 = arith.addf %170, %171 : vector<8x128xf32>
    %cst_12 = arith.constant 0.000000e+00 : f32
    %173 = vector.broadcast %cst_12 : f32 to vector<8x128xf32>
    %174 = arith.maximumf %172, %173 : vector<8x128xf32>
    %175 = vector.broadcast %43 : f32 to vector<8x128xf32>
    %176 = arith.mulf %174, %175 : vector<8x128xf32>
    %177 = arith.addf %162, %176 : vector<8x128xf32>
    %178 = vector.broadcast %8 : f32 to vector<8x128xf32>
    %179 = arith.mulf %50, %178 : vector<8x128xf32>
    %180 = vector.broadcast %17 : f32 to vector<8x128xf32>
    %181 = arith.mulf %53, %180 : vector<8x128xf32>
    %182 = arith.addf %179, %181 : vector<8x128xf32>
    %183 = vector.broadcast %26 : f32 to vector<8x128xf32>
    %184 = arith.mulf %56, %183 : vector<8x128xf32>
    %185 = arith.addf %182, %184 : vector<8x128xf32>
    %186 = vector.broadcast %35 : f32 to vector<8x128xf32>
    %187 = arith.addf %185, %186 : vector<8x128xf32>
    %cst_13 = arith.constant 0.000000e+00 : f32
    %188 = vector.broadcast %cst_13 : f32 to vector<8x128xf32>
    %189 = arith.maximumf %187, %188 : vector<8x128xf32>
    %190 = vector.broadcast %44 : f32 to vector<8x128xf32>
    %191 = arith.mulf %189, %190 : vector<8x128xf32>
    %192 = arith.addf %177, %191 : vector<8x128xf32>
    %193 = arith.index_cast %47 : i32 to index
    %c0_14 = arith.constant 0 : index
    %194 = vector.load %arg3[%193, %c0_14] : memref<8x128xf32, #tpu.memory_space<vmem>>, vector<8x128xf32>
    tpu.vector_store %arg3[%193, %c0_14], %192 {strides = array<i32>} : memref<8x128xf32, #tpu.memory_space<vmem>>, vector<8x128xf32>,
    %c1_i32 = arith.constant 1 : i32
    return
  }
  func.func @transform_0(%arg0: i32, %arg1: memref<46xf32, #tpu.memory_space<smem>>) -> (i32, i32, i32) {
    %c0_i32 = arith.constant 0 : i32
    %c0_i32_0 = arith.constant 0 : i32
    %c0_i32_1 = arith.constant 0 : i32
    return %c0_i32, %arg0, %c0_i32_0 : i32, i32, i32
  }
  func.func @transform_1(%arg0: i32, %arg1: memref<46xf32, #tpu.memory_space<smem>>) -> (i32, i32) {
    %c0_i32 = arith.constant 0 : i32
    %c0_i32_0 = arith.constant 0 : i32
    return %arg0, %c0_i32 : i32, i32
  }
}

</mosaic_0001>

<bundles_post_ra>
// kernel: tpu_custom_call.1
= control target key start
LH: loop header
LB: loop body
LE: loop exit
PB: predicated region body
PF: predicated region fallthrough
CT: control target
= control target key end

     0   :  { %s330_s9 = smov [#allocation3]   ;;  %s521_s0 = inlined_call_operand.hbm [shape: f32[46], index: 0, kind: input, shape index: {}]   ;;  %s522_s1 = inlined_call_operand.hbm [shape: f32[3,8,128], index: 1, kind: input, shape index: {}]   ;;  %s523_s2 = inlined_call_operand.hbm [shape: f32[8,128], index: 2, kind: output, shape index: {}]  }
   0x1   :  { %8 = dma.hbm_to_smem %s521_s0, 16, %s330_s9, [#allocation2] }
   0x2   :  { %324 = dma.done.wait [#allocation2], 16 }
   0x3   :  { %325 = vsyncadd [#allocation2], 4294967280 }
   0x4   :  { %10 = sfence }
   0x5   :  { %11 = vsyncpa [#allocation5], 0 }
   0x6   :  { %12 = vsyncpa [#allocation6], 0  ;;  %s331_s12 = smov [#allocation4]  }
   0x7   :  { %s18_s13 = sshll.u32 %s331_s12, 4  ;;  %s19_s13 = int_to_ptr.vmem [resolvable:$true] %s18_s13 }
   0x8   :  { %s292_s14 = scalar_lea.vmem %s19_s13, 384  ;;  %p297_p1 = scmp.lt.s32.totalorder %s19_s13, %s19_s13 }
   0x9   :  { %p293_p0 = scmp.ne.s32.totalorder %s19_s13, %s292_s14  ;;  %p298_p2 = scmp.lt.s32.totalorder %s292_s14, %s292_s14 }
   0xb   :  { %p299_p3 = por %p298_p2, %p297_p1 }
   0xd   :  { %p300_p4 = pnand %p299_p3, %p293_p0 }
   0xf   :  { %303 = shalt.err (!%p300_p4)
}
  0x10   :  { %s332_s15 = smov 128   ;;  %s333_s16 = smov 8  }
  0x11   :  { %24 = dma.hbm_to_vmem [thread:$0]  %s522_s1, 384, %s19_s13, [#allocation5], %s332_s15, %s332_s15, %s333_s16  }
  0x12   :  { %326 = dma.done.wait [#allocation5], 384  }
  0x13   :  { %327 = vsyncadd [#allocation5], 4294966912  ;;  %s356_s0 = sld [smem:[#allocation3]]  ;;  %v398_v0 = vld [vmem:[#allocation4] sm:$0xff]  ;;  %v400_v1 = vld [vmem:[#allocation4 + $0x8] sm:$0xff] }
  0x14   :  { %s358_s19 = sld [smem:[#allocation3 + $0x1]]  ;;  %v417_v10 = vld [vmem:[#allocation4 + $0x10] sm:$0xff] }
  0x15   :  { %s360_s20 = sld [smem:[#allocation3 + $0x2]] }
  0x16   :  { %s362_s21 = sld [smem:[#allocation3 + $0x3]] }
  0x17   :  { %s364_s22 = sld [smem:[#allocation3 + $0x4]] }
  0x18   :  { %s366_s23 = sld [smem:[#allocation3 + $0x5]] }
  0x19   :  { %s368_s24 = sld [smem:[#allocation3 + $0x6]]  ;;  %v82_v2 = vstv %s356_s0 }
  0x1a   :  { %s370_s25 = sld [smem:[#allocation3 + $0x7]]  ;;  %v96_v4 = vstv %s358_s19  ;;  %v83_v7 = vmul.f32 %v82_v2, %v398_v0 }
  0x1b   :  { %s372_s26 = sld [smem:[#allocation3 + $0x8]]  ;;  %v110_v5 = vstv %s360_s20  ;;  %v97_v12 = vmul.f32 %v96_v4, %v398_v0 }
  0x1c   :  { %s234_s1 = sld [smem:[#allocation3 + $0x9]]  ;;  %v124_v9 = vstv %s362_s21  ;;  %v111_v13 = vmul.f32 %v110_v5, %v398_v0 }
  0x1d   :  { %s374_s27 = sld [smem:[#allocation3 + $0xa]]  ;;  %v138_v17 = vstv %s364_s22  ;;  %v125_v20 = vmul.f32 %v124_v9, %v398_v0 }
  0x1e   :  { %s376_s28 = sld [smem:[#allocation3 + $0xb]]  ;;  %v152_v18 = vstv %s366_s23  ;;  %v139_v29 = vmul.f32 %v138_v17, %v398_v0 }
  0x1f   :  { %s378_s29 = sld [smem:[#allocation3 + $0xc]]  ;;  %v166_v21 = vstv %s368_s24  ;;  %v153_v30 = vmul.f32 %v152_v18, %v398_v0 }
  0x20   :  { %s380_s30 = sld [smem:[#allocation3 + $0xd]]  ;;  %v180_v22 = vstv %s370_s25  ;;  %v167_v34 = vmul.f32 %v166_v21, %v398_v0 }
  0x21   :  { %s382_s3 = sld [smem:[#allocation3 + $0xe]]  ;;  %v181_v38 = vmul.f32 %v180_v22, %v398_v0  ;;  %v194_v46 = vstv %s372_s26 }
  0x22   :  { %s384_s4 = sld [smem:[#allocation3 + $0xf]]  ;;  %v84_v3 = vstv %s234_s1  ;;  %v195_v57 = vmul.f32 %v194_v46, %v398_v0 }
  0x23   :  { %s386_s5 = sld [smem:[#allocation3 + $0x10]]  ;;  %v98_v6 = vstv %s374_s27  ;;  %v85_v8 = vmul.f32 %v84_v3, %v400_v1 }
  0x24   :  { %s388_s6 = sld [smem:[#allocation3 + $0x12]]  ;;  %v112_v14 = vstv %s376_s28  ;;  %v99_v15 = vmul.f32 %v98_v6, %v400_v1 }
  0x25   :  { %s390_s7 = sld [smem:[#allocation3 + $0x11]]  ;;  %v126_v16 = vstv %s378_s29  ;;  %v86_v23 = vadd.f32 %v85_v8, %v83_v7  ;;  %v113_v25 = vmul.f32 %v112_v14, %v400_v1 }
  0x26   :  { %s392_s8 = sld [smem:[#allocation3 + $0x13]]  ;;  %v140_v26 = vstv %s380_s30  ;;  %v127_v28 = vmul.f32 %v126_v16, %v400_v1  ;;  %v100_v31 = vadd.f32 %v99_v15, %v97_v12 }
  0x27   :  { %s394_s9 = sld [smem:[#allocation3 + $0x14]]  ;;  %v154_v33 = vstv %s382_s3  ;;  %v141_v36 = vmul.f32 %v140_v26, %v400_v1  ;;  %v114_v40 = vadd.f32 %v113_v25, %v111_v13 }
  0x28   :  { %s396_s10 = sld [smem:[#allocation3 + $0x15]]  ;;  %v168_v37 = vstv %s384_s4  ;;  %v128_v44 = vadd.f32 %v127_v28, %v125_v20  ;;  %v155_v45 = vmul.f32 %v154_v33, %v400_v1 }
  0x29   :  { %s403_s11 = sld [smem:[#allocation3 + $0x16]]  ;;  %v169_v49 = vmul.f32 %v168_v37, %v400_v1  ;;  %v182_v50 = vstv %s386_s5  ;;  %v142_v52 = vadd.f32 %v141_v36, %v139_v29  ;;  %s334_s5 = smov [#allocation7]  }
  0x2a   :  { %s407_s12 = sld [smem:[#allocation3 + $0x17]]  ;;  %v87_v11 = vstv %s388_s6  ;;  %v156_v60 = vadd.f32 %v155_v45, %v153_v30  ;;  %v183_v62 = vmul.f32 %v182_v50, %v400_v1  ;;  %s215_s6 = sshll.u32 %s334_s5, 4  ;;  %s216_s6 = int_to_ptr.vmem [resolvable:$true] %s215_s6 }
  0x2b   :  { %s410_s13 = sld [smem:[#allocation3 + $0x18]]  ;;  %v88_v24 = vmul.f32 %v87_v11, %v417_v10  ;;  %v196_v58 = vstv %s390_s7  ;;  %v170_v4 = vadd.f32 %v169_v49, %v167_v34  ;;  %s304_s7 = scalar_lea.vmem %s216_s6, 128 }
  0x2c   :  { %s415_s14 = sld [smem:[#allocation3 + $0x1b]]  ;;  %v101_v19 = vstv %s392_s8  ;;  %v197_v7 = vmul.f32 %v196_v58, %v400_v1  ;;  %v184_v15 = vadd.f32 %v183_v62, %v181_v38  ;;  %p305_p5 = scmp.ne.s32.totalorder %s216_s6, %s304_s7 }
  0x2d   :  { %s423_s15 = sld [smem:[#allocation3 + $0x19]]  ;;  %v115_v27 = vstv %s394_s9  ;;  %v102_v32 = vmul.f32 %v101_v19, %v417_v10  ;;  %v89_v39 = vadd.f32 %v88_v24, %v86_v23  ;;  %p309_p6 = scmp.lt.s32.totalorder %s216_s6, %s216_s6 }
  0x2e   :  { %s429_s16 = sld [smem:[#allocation3 + $0x1c]]  ;;  %v129_v35 = vstv %s396_s10  ;;  %v116_v41 = vmul.f32 %v115_v27, %v417_v10  ;;  %v198_v21 = vadd.f32 %v197_v7, %v195_v57  ;;  %p310_p7 = scmp.lt.s32.totalorder %s304_s7, %s304_s7 }
  0x2f   :  { %s435_s17 = sld [smem:[#allocation3 + $0x1a]]  ;;  %v143_v42 = vstv %s403_s11  ;;  %v103_v47 = vadd.f32 %v102_v32, %v100_v31  ;;  %v130_v48 = vmul.f32 %v129_v35, %v417_v10 }
  0x30   :  { %s440_s18 = sld [smem:[#allocation3 + $0x1d]]  ;;  %v144_v53 = vmul.f32 %v143_v42, %v417_v10  ;;  %v157_v54 = vstv %s407_s12  ;;  %v117_v56 = vadd.f32 %v116_v41, %v114_v40  ;;  %p311_p8 = por %p310_p7, %p309_p6 }
  0x31   :  { %s446_s0 = sld [smem:[#allocation3 + $0x1e]]  ;;  %v171_v61 = vstv %s410_s13  ;;  %v131_v2 = vadd.f32 %v130_v48, %v128_v44  ;;  %v158_v3 = vmul.f32 %v157_v54, %v417_v10 }
  0x32   :  { %s451_s19 = sld [smem:[#allocation3 + $0x1f]]  ;;  %v90_v43 = vstv %s415_s14  ;;  %v145_v5 = vadd.f32 %v144_v53, %v142_v52  ;;  %v172_v11 = vmul.f32 %v171_v61, %v417_v10  ;;  %p312_p9 = pnand %p311_p8, %p305_p5 }
  0x33   :  { %s457_s20 = sld [smem:[#allocation3 + $0x20]]  ;;  %v91_v55 = vadd.f32 %v90_v43, %v89_v39  ;;  %v185_v6 = vstv %s423_s15  ;;  %v159_v18 = vadd.f32 %v158_v3, %v156_v60 }
  0x34   :  { %s461_s21 = sld [smem:[#allocation3 + $0x24]]  ;;  %v104_v51 = vstv %s429_s16  ;;  %v186_v19 = vmul.f32 %v185_v6, %v417_v10  ;;  %v173_v26 = vadd.f32 %v172_v11, %v170_v4 }
  0x35   :  { %s466_s22 = sld [smem:[#allocation3 + $0x21]]  ;;  %v105_v63 = vadd.f32 %v104_v51, %v103_v47  ;;  %v92_v8 = vmax.f32 %v91_v55, 0.0  ;;  %v199_v12 = vstv %s435_s17 }
  0x36   :  { %s471_s23 = sld [smem:[#allocation3 + $0x25]]  ;;  %v118_v59 = vstv %s440_s18  ;;  %v200_v22 = vmul.f32 %v199_v12, %v417_v10  ;;  %v187_v32 = vadd.f32 %v186_v19, %v184_v15 }
  0x37   :  { %s476_s24 = sld [smem:[#allocation3 + $0x22]]  ;;  %v132_v0 = vstv %s446_s0  ;;  %v119_v9 = vadd.f32 %v118_v59, %v117_v56  ;;  %v106_v16 = vmax.f32 %v105_v63, 0.0 }
  0x38   :  { %s480_s25 = sld [smem:[#allocation3 + $0x26]]  ;;  %v146_v14 = vstv %s451_s19  ;;  %v133_v17 = vadd.f32 %v132_v0, %v131_v2  ;;  %v201_v35 = vadd.f32 %v200_v22, %v198_v21 }
  0x39   :  { %s485_s26 = sld [smem:[#allocation3 + $0x23]]  ;;  %v160_v20 = vstv %s457_s20  ;;  %v120_v24 = vmax.f32 %v119_v9, 0.0  ;;  %v147_v25 = vadd.f32 %v146_v14, %v145_v5 }
  0x3a   :  { %s488_s1 = sld [smem:[#allocation3 + $0x27]]  ;;  %v93_v13 = vstv %s461_s21  ;;  %v134_v30 = vmax.f32 %v133_v17, 0.0  ;;  %v161_v31 = vadd.f32 %v160_v20, %v159_v18 }
  0x3b   :  { %s493_s27 = sld [smem:[#allocation3 + $0x28]]  ;;  %v94_v23 = vmul.f32 %v93_v13, %v92_v8  ;;  %v174_v28 = vstv %s466_s22  ;;  %v148_v38 = vmax.f32 %v147_v25, 0.0 }
  0x3c   :  { %s270_s28 = sld [smem:[#allocation3 + $0x2d]]  ;;  %v107_v1 = vstv %s471_s23  ;;  %v175_v39 = vadd.f32 %v174_v28, %v173_v26  ;;  %v162_v44 = vmax.f32 %v161_v31, 0.0 }
  0x3d   :  { %s500_s29 = sld [smem:[#allocation3 + $0x29]]  ;;  %v108_v29 = vmul.f32 %v107_v1, %v106_v16  ;;  %v188_v10 = vstv %s476_s24 }
  0x3e   :  { %s505_s30 = sld [smem:[#allocation3 + $0x2a]]  ;;  %v121_v27 = vstv %s480_s25  ;;  %v189_v45 = vadd.f32 %v188_v10, %v187_v32  ;;  %v176_v49 = vmax.f32 %v175_v39, 0.0 }
  0x3f   :  { %s509_s3 = sld [smem:[#allocation3 + $0x2b]]  ;;  %v122_v37 = vmul.f32 %v121_v27, %v120_v24  ;;  %v202_v41 = vstv %s485_s26 }
  0x40   :  { %v135_v34 = vstv %s488_s1  ;;  %s269_s4 = sld [smem:[#allocation3 + $0x2c]]  ;;  %v203_v50 = vadd.f32 %v202_v41, %v201_v35  ;;  %v190_v54 = vmax.f32 %v189_v45, 0.0 }
  0x41   :  { %v149_v40 = vstv %s493_s27  ;;  %v136_v43 = vmul.f32 %v135_v34, %v134_v30 }
  0x42   :  { %v81_v33 = vstv %s270_s28  ;;  %v150_v48 = vmul.f32 %v149_v40, %v148_v38  ;;  %v204_v58 = vmax.f32 %v203_v50, 0.0 }
  0x43   :  { %v95_v36 = vadd.f32 %v94_v23, %v81_v33  ;;  %v163_v46 = vstv %s500_s29 }
  0x44   :  { %v177_v51 = vstv %s505_s30  ;;  %v164_v53 = vmul.f32 %v163_v46, %v162_v44 }
  0x45   :  { %v109_v42 = vadd.f32 %v108_v29, %v95_v36  ;;  %v191_v55 = vstv %s509_s3  ;;  %v178_v57 = vmul.f32 %v177_v51, %v176_v49 }
  0x46   :  { %v205_v59 = vstv %s269_s4  ;;  %v192_v61 = vmul.f32 %v191_v55, %v190_v54 }
  0x47   :  { %v123_v47 = vadd.f32 %v122_v37, %v109_v42  ;;  %v206_v63 = vmul.f32 %v205_v59, %v204_v58 }
  0x49   :  { %v137_v52 = vadd.f32 %v136_v43, %v123_v47 }
  0x4b   :  { %v151_v56 = vadd.f32 %v150_v48, %v137_v52 }
  0x4d   :  { %v165_v60 = vadd.f32 %v164_v53, %v151_v56 }
  0x4f   :  { %v179_v62 = vadd.f32 %v178_v57, %v165_v60 }
  0x51   :  { %v193_v2 = vadd.f32 %v192_v61, %v179_v62 }
  0x53   :  { %v207_v3 = vadd.f32 %v206_v63, %v193_v2 }
  0x55   :  { %208 = vst [vmem:[#allocation7] sm:$0xff] %v207_v3 }
  0x56   :  { %315 = shalt.err (!%p312_p9)
}
  0x57   :  { %218 = dma.vmem_to_hbm [thread:$0]  %s216_s6, 128, %s523_s2, [#allocation6]  }
  0x58   :  { %328 = dma.done.wait [#allocation6], 128  }
  0x59   :  { %329 = vsyncadd [#allocation6], 4294967168 }
  0x5a   :  { %222 = vsyncpa [#allocation5], 1 }
  0x5b   :  { %223 = vsyncpa [#allocation6], 1 }

</bundles_post_ra>
